<compile_context>
chip_gen: v5e
topology: v5e:2x2
jax: 0.10.0
libtpu: 0.0.40
codegen_flags: <defaults>
</compile_context>

<pallas_src>
import functools

import jax
import jax.numpy as jnp
from jax import lax
from jax.experimental import pallas as pl
from jax.experimental.pallas import tpu as pltpu

BN_EPS = 1e-5
VMEM_LIMIT_BYTES = 32 * 1024 * 1024
X_RESIDENT_BUDGET = 24 * 1024 * 1024   # leave headroom under the 32 MiB limit


def _round_up(x, m):
    return ((x + m - 1) // m) * m


def hypertensor_kernel(scale_ref,        # SMEM (1,) f32        (scalar prefetch)
                       x_ref,            # VMEM bf16: (B_pad, K_pad) resident OR (B_pad, tk) streamed
                       w_ref,            # VMEM (tk, tn) bf16   (weight pre-transposed [In, Out])
                       p_ref,            # VMEM (8, tn) f32     rows: bias, g1, be1, g2, be2, 0, 0, 0
                       o_ref,            # VMEM (B_pad, tn) f32
                       acc_ref,          # VMEM (B_pad, tn) f32 scratch
                       *, b_real, b_pad, tk, x_resident):
    k = pl.program_id(1)

    if x_resident:
        x_blk = x_ref[:, pl.ds(pl.multiple_of(k * tk, tk), tk)]
    else:
        x_blk = x_ref[...]

    # MXU: [B_pad, tk] x [tk, tn] -> [B_pad, tn] f32 (plain M,K x K,N; tn on lanes).
    part = jnp.dot(x_blk, w_ref[...], preferred_element_type=jnp.float32)

    @pl.when(k == 0)
    def _():
        acc_ref[...] = part + p_ref[0:1, :]          # fold bias into the init

    @pl.when(k != 0)
    def _():
        acc_ref[...] += part

    @pl.when(k == pl.num_programs(1) - 1)
    def _():
        z = acc_ref[...]                             # [B_pad, tn] f32
        inv_b = jnp.float32(1.0 / b_real)

        # Mask so BN statistics only see true batch rows (padding excluded).
        if b_real < b_pad:
            row = lax.broadcasted_iota(jnp.int32, z.shape, 0)
            mask = (row < b_real).astype(jnp.float32)
            zm = z * mask
        else:
            zm = z

        # BatchNorm1d #1 (train mode), single pass: var = E[z^2] - mean^2.
        mean1 = jnp.sum(zm, axis=0, keepdims=True) * inv_b
        var1 = jnp.maximum(
            jnp.sum(zm * z, axis=0, keepdims=True) * inv_b - mean1 * mean1, 0.0)
        z = (z - mean1) * lax.rsqrt(var1 + BN_EPS) * p_ref[1:2, :] + p_ref[2:3, :]

        # tanh * learnable scalar scale (EUP tanh, SMEM scalar).
        z = jnp.tanh(z) * scale_ref[0]

        # Hyperoperation order 2: (0.5 * z) ** 2  ==  z * z * 0.25.
        z = z * z * 0.25

        # BatchNorm1d #2 (train mode), single pass.
        if b_real < b_pad:
            zm = z * mask
        else:
            zm = z
        mean2 = jnp.sum(zm, axis=0, keepdims=True) * inv_b
        var2 = jnp.maximum(
            jnp.sum(zm * z, axis=0, keepdims=True) * inv_b - mean2 * mean2, 0.0)
        z = (z - mean2) * lax.rsqrt(var2 + BN_EPS) * p_ref[3:4, :] + p_ref[4:5, :]

        # ReLU, lane-dense store.
        o_ref[...] = jnp.maximum(z, 0.0)


def prepare_params(weight, bias, bn1_gamma, bn1_beta, bn2_gamma, bn2_beta, scale,
                   *, tk=512):
    """One-time (amortized across calls) weight transpose/pad/cast + param packing."""
    out_size, in_size = weight.shape

    n_pad = _round_up(out_size, 128)
    tn = 256 if n_pad % 256 == 0 else 128            # 256-wide MXU N when Out allows

    k_min = _round_up(in_size, 256)                  # tk a multiple of 256
    tk = max(256, min(_round_up(tk, 256), k_min))
    k_pad = _round_up(in_size, tk)

    # Weight -> [In, Out] bf16, padded (one-time HBM pass, cached by the caller).
    w_t = weight.astype(jnp.bfloat16).T              # [In, Out]
    if (k_pad - in_size) or (n_pad - out_size):
        w_t = jnp.pad(w_t, ((0, k_pad - in_size), (0, n_pad - out_size)))

    # Pack per-column params into one (8, N_pad) f32 array (one DMA per Out tile).
    p = jnp.zeros((8, n_pad), jnp.float32)
    p = p.at[0, :out_size].set(bias.reshape(-1).astype(jnp.float32))
    p = p.at[1, :out_size].set(bn1_gamma.reshape(-1).astype(jnp.float32))
    p = p.at[2, :out_size].set(bn1_beta.reshape(-1).astype(jnp.float32))
    p = p.at[3, :out_size].set(bn2_gamma.reshape(-1).astype(jnp.float32))
    p = p.at[4, :out_size].set(bn2_beta.reshape(-1).astype(jnp.float32))

    sc = jnp.asarray(scale, jnp.float32).reshape(1)

    return dict(w=w_t, p=p, scale=sc, out_size=out_size, in_size=in_size,
                n_pad=n_pad, k_pad=k_pad, tn=tn, tk=tk)


def hypertensor_forward(x, params):
    """x: [B, ...] (flattened internally). Returns [B, out_size] f32."""
    out_size, in_size = params["out_size"], params["in_size"]
    n_pad, k_pad, tn, tk = params["n_pad"], params["k_pad"], params["tn"], params["tk"]

    B = x.shape[0]
    x_flat = x.reshape(B, -1)
    assert x_flat.shape[1] == in_size

    # Batch padded to a multiple of 16 (bf16 sublane packing); padded rows are
    # masked out of the BN statistics inside the kernel.
    b_pad = _round_up(max(B, 16), 16)
    x_bf = x_flat.astype(jnp.bfloat16)
    if (b_pad - B) or (k_pad - in_size):
        x_bf = jnp.pad(x_bf, ((0, b_pad - B), (0, k_pad - in_size)))

    n_tiles = n_pad // tn
    k_tiles = k_pad // tk

    # Extra W pipeline depth only pays off (and is only meaningful) on longer grids.
    w_buffers = 3 if n_tiles * k_tiles >= 3 else 2

    # VMEM budget (v7x-safe): x (assume double-buffered) + W buffers + out dbl-buf
    # + accumulator + packed params.
    fixed_bytes = (w_buffers * tk * tn * 2          # W tiles (bf16)
                   + 2 * b_pad * tn * 4             # out double buffer (f32)
                   + b_pad * tn * 4                 # accumulator scratch (f32)
                   + 2 * 8 * tn * 4)                # packed params
    x_resident = (2 * b_pad * k_pad * 2 + fixed_bytes) <= X_RESIDENT_BUDGET

    if x_resident:
        # x DMA'd from HBM exactly once (constant block index); kernel slices per K step.
        x_spec = pl.BlockSpec((b_pad, k_pad), lambda j, k, s: (0, 0))
    else:
        # Fallback: streams x per K step; NOTE this re-reads x once per Out tile.
        x_spec = pl.BlockSpec((b_pad, tk), lambda j, k, s: (0, k))

    w_spec = pl.BlockSpec((tk, tn), lambda j, k, s: (k, j),
                          pipeline_mode=pl.Buffered(w_buffers))
    p_spec = pl.BlockSpec((8, tn), lambda j, k, s: (0, j))
    out_spec = pl.BlockSpec((b_pad, tn), lambda j, k, s: (0, j))

    kernel = functools.partial(hypertensor_kernel, b_real=B, b_pad=b_pad,
                               tk=tk, x_resident=x_resident)

    x_bytes = b_pad * k_pad * 2 * (1 if x_resident else n_tiles)
    out_p = pl.pallas_call(
        kernel,
        out_shape=jax.ShapeDtypeStruct((b_pad, n_pad), jnp.float32),
        grid_spec=pltpu.PrefetchScalarGridSpec(
            num_scalar_prefetch=1,                              # scale -> SMEM
            grid=(n_tiles, k_tiles),
            in_specs=[x_spec, w_spec, p_spec],
            out_specs=out_spec,
            scratch_shapes=[pltpu.VMEM((b_pad, tn), jnp.float32)],
        ),
        compiler_params=pltpu.CompilerParams(
            dimension_semantics=("parallel", "arbitrary"),
            vmem_limit_bytes=VMEM_LIMIT_BYTES),
        cost_estimate=pl.CostEstimate(
            flops=2 * B * in_size * out_size,
            transcendentals=B * out_size,
            bytes_accessed=(k_pad * n_pad * 2       # weight (bf16)
                            + x_bytes               # x (bf16)
                            + b_pad * n_pad * 4)),  # output (f32)
    )(params["scale"], x_bf, params["w"], params["p"])

    return out_p[:B, :out_size]


def reference_forward(x_flat, weight, bias, g1, be1, g2, be2, scale):
    """Pure-JAX f32 reference (train-mode BatchNorm1d, biased variance)."""
    z = x_flat @ weight.T + bias
    m1 = jnp.mean(z, axis=0)
    v1 = jnp.mean((z - m1) ** 2, axis=0)
    z = (z - m1) / jnp.sqrt(v1 + BN_EPS) * g1 + be1
    z = jnp.tanh(z) * scale
    z = (0.5 * z) ** 2
    m2 = jnp.mean(z, axis=0)
    v2 = jnp.mean((z - m2) ** 2, axis=0)
    z = (z - m2) / jnp.sqrt(v2 + BN_EPS) * g2 + be2
    return jnp.maximum(z, 0.0)


if __name__ == "__main__":
    key = jax.random.PRNGKey(0)
    k_x, k_w = jax.random.split(key)

    # Small shapes consistent with the module: image-like input flattened.
    B, C, H, W = 2, 4, 16, 16
    input_size = C * H * W          # 1024
    output_size = 32
    hyperoperation_order = 2

    x = jax.random.normal(k_x, (B, C, H, W), dtype=jnp.float32)

    # Deterministic parameter init (mirrors the module's __init__):
    init_scale = 0.01 / (2 ** (hyperoperation_order - 1))   # 0.005
    weight = jax.random.normal(k_w, (output_size, input_size),
                               dtype=jnp.float32) * init_scale
    bias = jnp.zeros((output_size,), jnp.float32)
    bn1_gamma = jnp.ones((output_size,), jnp.float32)
    bn1_beta = jnp.zeros((output_size,), jnp.float32)
    bn2_gamma = jnp.ones((output_size,), jnp.float32)
    bn2_beta = jnp.zeros((output_size,), jnp.float32)
    scale = jnp.float32(init_scale)

    # One-time parameter prep (amortized across calls in real use).
    params = prepare_params(weight, bias, bn1_gamma, bn1_beta,
                            bn2_gamma, bn2_beta, scale)

    out = hypertensor_forward(x, params)
    jax.block_until_ready(out)

    assert out.shape == (B, output_size)
    assert bool(jnp.all(jnp.isfinite(out)))

    # Correctness check against a pure-JAX f32 reference. The kernel's matmul uses
    # bf16 operands (documented deviation from PyTorch's f32 GEMM); to isolate that
    # intentional quantization, the reference is fed bf16-rounded x / W.
    xq = x.reshape(B, -1).astype(jnp.bfloat16).astype(jnp.float32)
    wq = weight.astype(jnp.bfloat16).astype(jnp.float32)
    ref = reference_forward(xq, wq, bias, bn1_gamma, bn1_beta,
                            bn2_gamma, bn2_beta, scale)
    max_err = float(jnp.max(jnp.abs(out - ref)))
    assert max_err < 1e-3, f"max |kernel - ref| = {max_err}"

    print("KERNEL_OK")
</pallas_src>

<mosaic_0001>
module attributes {stable_mosaic.version = 11 : i64} {
  func.func @hypertensor_kernel(%arg0: i32, %arg1: i32, %arg2: memref<1xf32, #tpu.memory_space<smem>>, %arg3: memref<16x1024xbf16, #tpu.memory_space<vmem>>, %arg4: memref<512x128xbf16, #tpu.memory_space<vmem>>, %arg5: memref<8x128xf32, #tpu.memory_space<vmem>>, %arg6: memref<16x128xf32, #tpu.memory_space<vmem>>, %arg7: memref<16x128xf32, #tpu.memory_space<vmem>>) attributes {dimension_semantics = [#tpu.dimension_semantics<parallel>, #tpu.dimension_semantics<arbitrary>], iteration_bounds = array<i64: 1, 2>, scalar_prefetch = 1 : i64, scratch_operands = 1 : i64, tpu.core_type = #tpu.core_type<tc>, window_params = [{pipeline_mode = #tpu.pipeline_mode<synchronous>, transform_indices = @transform_0, window_bounds = array<i64: 16, 1024>}, {pipeline_mode = #tpu.pipeline_mode<double_buffered>, transform_indices = @transform_1, window_bounds = array<i64: 512, 128>}, {transform_indices = @transform_2, window_bounds = array<i64: 8, 128>}, {transform_indices = @transform_3, window_bounds = array<i64: 16, 128>}]} {
    %c512_i32 = arith.constant 512 : i32
    %0 = arith.muli %arg1, %c512_i32 : i32
    %1 = tpu.assume_multiple %0, 512 : i32
    %c0 = arith.constant 0 : index
    %2 = arith.index_cast %1 : i32 to index
    %3 = vector.load %arg3[%c0, %2] : memref<16x1024xbf16, #tpu.memory_space<vmem>>, vector<16x512xbf16>
    %c0_0 = arith.constant 0 : index
    %c0_1 = arith.constant 0 : index
    %4 = vector.load %arg4[%c0_0, %c0_1] : memref<512x128xbf16, #tpu.memory_space<vmem>>, vector<512x128xbf16>
    %cst = arith.constant dense<0.000000e+00> : vector<16x128xf32>
    %5 = tpu.matmul %3, %4, %cst {dimension_numbers = #tpu.dot_dimension_numbers<[1], [0], [0], [1], [0, 0, 1, 1], [], []>} : vector<16x512xbf16>, vector<512x128xbf16>, vector<16x128xf32> -> vector<16x128xf32>
    %c0_i32 = arith.constant 0 : i32
    %6 = arith.cmpi eq, %arg1, %c0_i32 : i32
    %7 = arith.extui %6 : i1 to i32
    %c0_i32_2 = arith.constant 0 : i32
    %8 = arith.cmpi ne, %7, %c0_i32_2 : i32
    scf.if %8 {
      %c0_6 = arith.constant 0 : index
      %c0_7 = arith.constant 0 : index
      %15 = vector.load %arg5[%c0_6, %c0_7] : memref<8x128xf32, #tpu.memory_space<vmem>>, vector<1x128xf32>
      %16 = vector.broadcast %15 : vector<1x128xf32> to vector<16x128xf32>
      %17 = arith.addf %5, %16 : vector<16x128xf32>
      %c0_8 = arith.constant 0 : index
      %c0_9 = arith.constant 0 : index
      %18 = vector.load %arg7[%c0_8, %c0_9] : memref<16x128xf32, #tpu.memory_space<vmem>>, vector<16x128xf32>
      tpu.vector_store %arg7[%c0_8, %c0_9], %17 {strides = array<i32>} : memref<16x128xf32, #tpu.memory_space<vmem>>, vector<16x128xf32>,
    } else {
    }
    %c0_i32_3 = arith.constant 0 : i32
    %9 = arith.cmpi ne, %arg1, %c0_i32_3 : i32
    %10 = arith.extui %9 : i1 to i32
    %c0_i32_4 = arith.constant 0 : i32
    %11 = arith.cmpi ne, %10, %c0_i32_4 : i32
    scf.if %11 {
      %c0_6 = arith.constant 0 : index
      %c0_7 = arith.constant 0 : index
      %15 = vector.load %arg7[%c0_6, %c0_7] : memref<16x128xf32, #tpu.memory_space<vmem>>, vector<16x128xf32>
      %16 = arith.addf %15, %5 : vector<16x128xf32>
      %c0_8 = arith.constant 0 : index
      %c0_9 = arith.constant 0 : index
      %17 = vector.load %arg7[%c0_8, %c0_9] : memref<16x128xf32, #tpu.memory_space<vmem>>, vector<16x128xf32>
      tpu.vector_store %arg7[%c0_8, %c0_9], %16 {strides = array<i32>} : memref<16x128xf32, #tpu.memory_space<vmem>>, vector<16x128xf32>,
    } else {
    }
    %c1_i32 = arith.constant 1 : i32
    %12 = arith.cmpi eq, %arg1, %c1_i32 : i32
    %13 = arith.extui %12 : i1 to i32
    %c0_i32_5 = arith.constant 0 : i32
    %14 = arith.cmpi ne, %13, %c0_i32_5 : i32
    scf.if %14 {
      %c0_6 = arith.constant 0 : index
      %c0_7 = arith.constant 0 : index
      %15 = vector.load %arg7[%c0_6, %c0_7] : memref<16x128xf32, #tpu.memory_space<vmem>>, vector<16x128xf32>
      %16 = tpu.iota {dimensions = array<i32: 0>} : vector<16x128xi32>
      %c2_i32 = arith.constant 2 : i32
      %17 = vector.broadcast %c2_i32 : i32 to vector<16x128xi32>
      %18 = arith.cmpi slt, %16, %17 : vector<16x128xi32>
      %19 = arith.extui %18 : vector<16x128xi1> to vector<16x128xi32>
      %20 = arith.sitofp %19 : vector<16x128xi32> to vector<16x128xf32>
      %21 = arith.mulf %15, %20 : vector<16x128xf32>
      %cst_8 = arith.constant dense<0.000000e+00> : vector<128xf32>
      %22 = vector.multi_reduction <add>, %21, %cst_8 [0] : vector<16x128xf32> to vector<128xf32>
      %23 = vector.shape_cast %22 : vector<128xf32> to vector<1x128xf32>
      %cst_9 = arith.constant 5.000000e-01 : f32
      %24 = vector.broadcast %cst_9 : f32 to vector<1x128xf32>
      %25 = arith.mulf %23, %24 : vector<1x128xf32>
      %26 = arith.mulf %21, %15 : vector<16x128xf32>
      %cst_10 = arith.constant dense<0.000000e+00> : vector<128xf32>
      %27 = vector.multi_reduction <add>, %26, %cst_10 [0] : vector<16x128xf32> to vector<128xf32>
      %28 = vector.shape_cast %27 : vector<128xf32> to vector<1x128xf32>
      %cst_11 = arith.constant 5.000000e-01 : f32
      %29 = vector.broadcast %cst_11 : f32 to vector<1x128xf32>
      %30 = arith.mulf %28, %29 : vector<1x128xf32>
      %31 = arith.mulf %25, %25 : vector<1x128xf32>
      %32 = arith.subf %30, %31 : vector<1x128xf32>
      %cst_12 = arith.constant 0.000000e+00 : f32
      %33 = vector.broadcast %cst_12 : f32 to vector<1x128xf32>
      %34 = arith.maximumf %32, %33 : vector<1x128xf32>
      %35 = vector.broadcast %25 : vector<1x128xf32> to vector<16x128xf32>
      %36 = arith.subf %15, %35 : vector<16x128xf32>
      %cst_13 = arith.constant 9.99999974E-6 : f32
      %37 = vector.broadcast %cst_13 : f32 to vector<1x128xf32>
      %38 = arith.addf %34, %37 : vector<1x128xf32>
      %39 = math.rsqrt %38 : vector<1x128xf32>
      %40 = vector.broadcast %39 : vector<1x128xf32> to vector<16x128xf32>
      %41 = arith.mulf %36, %40 : vector<16x128xf32>
      %c1 = arith.constant 1 : index
      %c0_14 = arith.constant 0 : index
      %42 = vector.load %arg5[%c1, %c0_14] : memref<8x128xf32, #tpu.memory_space<vmem>>, vector<1x128xf32>
      %43 = vector.broadcast %42 : vector<1x128xf32> to vector<16x128xf32>
      %44 = arith.mulf %41, %43 : vector<16x128xf32>
      %c2 = arith.constant 2 : index
      %c0_15 = arith.constant 0 : index
      %45 = vector.load %arg5[%c2, %c0_15] : memref<8x128xf32, #tpu.memory_space<vmem>>, vector<1x128xf32>
      %46 = vector.broadcast %45 : vector<1x128xf32> to vector<16x128xf32>
      %47 = arith.addf %44, %46 : vector<16x128xf32>
      %48 = math.tanh %47 : vector<16x128xf32>
      %c0_16 = arith.constant 0 : index
      %49 = memref.load %arg2[%c0_16] : memref<1xf32, #tpu.memory_space<smem>>
      %50 = vector.broadcast %49 : f32 to vector<16x128xf32>
      %51 = arith.mulf %48, %50 : vector<16x128xf32>
      %52 = arith.mulf %51, %51 : vector<16x128xf32>
      %cst_17 = arith.constant 2.500000e-01 : f32
      %53 = vector.broadcast %cst_17 : f32 to vector<16x128xf32>
      %54 = arith.mulf %52, %53 : vector<16x128xf32>
      %55 = arith.mulf %54, %20 : vector<16x128xf32>
      %cst_18 = arith.constant dense<0.000000e+00> : vector<128xf32>
      %56 = vector.multi_reduction <add>, %55, %cst_18 [0] : vector<16x128xf32> to vector<128xf32>
      %57 = vector.shape_cast %56 : vector<128xf32> to vector<1x128xf32>
      %cst_19 = arith.constant 5.000000e-01 : f32
      %58 = vector.broadcast %cst_19 : f32 to vector<1x128xf32>
      %59 = arith.mulf %57, %58 : vector<1x128xf32>
      %60 = arith.mulf %55, %54 : vector<16x128xf32>
      %cst_20 = arith.constant dense<0.000000e+00> : vector<128xf32>
      %61 = vector.multi_reduction <add>, %60, %cst_20 [0] : vector<16x128xf32> to vector<128xf32>
      %62 = vector.shape_cast %61 : vector<128xf32> to vector<1x128xf32>
      %cst_21 = arith.constant 5.000000e-01 : f32
      %63 = vector.broadcast %cst_21 : f32 to vector<1x128xf32>
      %64 = arith.mulf %62, %63 : vector<1x128xf32>
      %65 = arith.mulf %59, %59 : vector<1x128xf32>
      %66 = arith.subf %64, %65 : vector<1x128xf32>
      %cst_22 = arith.constant 0.000000e+00 : f32
      %67 = vector.broadcast %cst_22 : f32 to vector<1x128xf32>
      %68 = arith.maximumf %66, %67 : vector<1x128xf32>
      %69 = vector.broadcast %59 : vector<1x128xf32> to vector<16x128xf32>
      %70 = arith.subf %54, %69 : vector<16x128xf32>
      %cst_23 = arith.constant 9.99999974E-6 : f32
      %71 = vector.broadcast %cst_23 : f32 to vector<1x128xf32>
      %72 = arith.addf %68, %71 : vector<1x128xf32>
      %73 = math.rsqrt %72 : vector<1x128xf32>
      %74 = vector.broadcast %73 : vector<1x128xf32> to vector<16x128xf32>
      %75 = arith.mulf %70, %74 : vector<16x128xf32>
      %c3 = arith.constant 3 : index
      %c0_24 = arith.constant 0 : index
      %76 = vector.load %arg5[%c3, %c0_24] : memref<8x128xf32, #tpu.memory_space<vmem>>, vector<1x128xf32>
      %77 = vector.broadcast %76 : vector<1x128xf32> to vector<16x128xf32>
      %78 = arith.mulf %75, %77 : vector<16x128xf32>
      %c4 = arith.constant 4 : index
      %c0_25 = arith.constant 0 : index
      %79 = vector.load %arg5[%c4, %c0_25] : memref<8x128xf32, #tpu.memory_space<vmem>>, vector<1x128xf32>
      %80 = vector.broadcast %79 : vector<1x128xf32> to vector<16x128xf32>
      %81 = arith.addf %78, %80 : vector<16x128xf32>
      %cst_26 = arith.constant 0.000000e+00 : f32
      %82 = vector.broadcast %cst_26 : f32 to vector<16x128xf32>
      %83 = arith.maximumf %81, %82 : vector<16x128xf32>
      %c0_27 = arith.constant 0 : index
      %c0_28 = arith.constant 0 : index
      %84 = vector.load %arg6[%c0_27, %c0_28] : memref<16x128xf32, #tpu.memory_space<vmem>>, vector<16x128xf32>
      tpu.vector_store %arg6[%c0_27, %c0_28], %83 {strides = array<i32>} : memref<16x128xf32, #tpu.memory_space<vmem>>, vector<16x128xf32>,
    } else {
    }
    return
  }
  func.func @transform_0(%arg0: i32, %arg1: i32, %arg2: memref<1xf32, #tpu.memory_space<smem>>) -> (i32, i32) {
    %c0_i32 = arith.constant 0 : i32
    %c0_i32_0 = arith.constant 0 : i32
    %c0_i32_1 = arith.constant 0 : i32
    return %c0_i32, %c0_i32_0 : i32, i32
  }
  func.func @transform_1(%arg0: i32, %arg1: i32, %arg2: memref<1xf32, #tpu.memory_space<smem>>) -> (i32, i32) {
    %c0_i32 = arith.constant 0 : i32
    return %arg1, %arg0 : i32, i32
  }
  func.func @transform_2(%arg0: i32, %arg1: i32, %arg2: memref<1xf32, #tpu.memory_space<smem>>) -> (i32, i32) {
    %c0_i32 = arith.constant 0 : i32
    %c0_i32_0 = arith.constant 0 : i32
    return %c0_i32, %arg0 : i32, i32
  }
  func.func @transform_3(%arg0: i32, %arg1: i32, %arg2: memref<1xf32, #tpu.memory_space<smem>>) -> (i32, i32) {
    %c0_i32 = arith.constant 0 : i32
    %c0_i32_0 = arith.constant 0 : i32
    return %c0_i32, %arg0 : i32, i32
  }
}

</mosaic_0001>

<bundles_post_ra>
// kernel: tpu_custom_call.1
= control target key start
LH: loop header
LB: loop body
LE: loop exit
PB: predicated region body
PF: predicated region fallthrough
CT: control target
= control target key end

     0   :  { %s1513_s0 = inlined_call_operand.<no memory space> [shape: f32[1], index: 0, kind: input, shape index: {}]   ;;  %s1514_s1 = inlined_call_operand.hbm [shape: bf16[16,1024], index: 1, kind: input, shape index: {}]   ;;  %s1515_s2 = inlined_call_operand.hbm [shape: bf16[1024,128], index: 2, kind: input, shape index: {}]   ;;  %s1516_s3 = inlined_call_operand.hbm [shape: f32[8,128], index: 3, kind: input, shape index: {}]   ;;  %s1517_s4 = inlined_call_operand.hbm [shape: f32[16,128], index: 4, kind: output, shape index: {}]  }
   0x1   :  { %9 = sst [smem:[#allocation4]] %s1513_s0 }
   0x2   :  { %10 = vsyncpa [#allocation6], 0 }
   0x3   :  { %11 = vsyncpa [#allocation9], 0 }
   0x4   :  { %13 = vsyncpa [#allocation9 + $0x1], 0 }
   0x5   :  { %14 = vsyncpa [#allocation7], 0  ;;  %s1349_s17 = smov 0   ;;  %s1351_s18 = smov 0  }
   0x6   :  { %s1353_s19 = smov 0   ;;  %s1355_s20 = smov 0  }
   0x7   :  { %s1357_s21 = smov 0   ;;  %s1359_s22 = smov 0  }
   0x8 LB: > { %s1378_s0 = sadd.s32 4294967295, %s1309_s22   ;;  %s62_s23 = sadd.s32 1, %s1297_s19  ;;  %s1309_s22 = sphi %s1359_s22, %s20_s22   ;;  %s1305_s21 = sphi %s1357_s21, %s1526_s21   ;;  %s1301_s20 = sphi %s1355_s20, %s1525_s20   ;;  %s1297_s19 = sphi %s1353_s19, %s1524_s19   ;;  %s1293_s18 = sphi %s1351_s18, %s1523_s18   ;;  %s1289_s17 = sphi %s1349_s17, %s1522_s17  }
   0x9   : > { %p69_p0 = scmp.ne.s32.totalorder %s1297_s19, %s1293_s18  ;;  %p70_p1 = scmp.eq.s32.totalorder %s1309_s22, 0 }
   0xa   : > { %p75_p2 = scmp.ne.s32.totalorder %s1293_s18, %s1289_s17  ;;  %p76_p3 = scmp.eq.s32.totalorder %s1378_s0, 0 }
   0xb   : > { %p1386_p4 = por %p70_p1, %p69_p0  ;;  %p824_p5 = scmp.ge.s32.totalorder %s1309_s22, 1 }
   0xc   : > { %p1393_p6 = por %p76_p3, %p75_p2  ;;  %p138_p7 = scmp.lt.s32.totalorder %s1309_s22, 3 }
   0xd   : > { %s166_s28 = sshll.u32 %s1516_s3, 4  ;;  %s1311_s30 = smov [#allocation10]   ;;  %s167_s28 = int_to_ptr.hbm [resolvable:$true] %s166_s28 }
   0xe   : > { %p1401_p8 = pnand %p824_p5, %p138_p7  ;;  %s168_s5 = sshll.u32 %s1311_s30, 4  ;;  %s169_s5 = int_to_ptr.vmem [resolvable:$true] %s168_s5 }
   0xf   : > { %p1053_p10 = scmp.lt.s32.totalorder %s1309_s22, 2  ;;  %s149_s9 = sshll.u32 %s1514_s1, 4  ;;  %s150_s9 = int_to_ptr.hbm [resolvable:$true] %s149_s9 }
  0x10   : > { %p1040_p9 = pneg %p1401_p8  ;;  %s1312_s10 = smov [#allocation5]  }
  0x11   : > { %p1412_p12 = pnand %p1053_p10, %p1386_p4  ;;  %s151_s11 = sshll.u32 %s1312_s10, 4  ;;  %s152_s11 = int_to_ptr.vmem [resolvable:$true] %s151_s11 }
  0x12   : > { %p1041_p11 = pnand %p1040_p9, %p76_p3  ;;  %s1313_s12 = smov 512  }
  0x13   : > { %s1314_s13 = smov 32   ;;  %s179_s14 = sand.u32 1, %s1309_s22  }
  0x14   : > { %1046 = dma.hbm_to_vmem [thread:$0]  (!%p1041_p11), %s167_s28, 128, %s169_s5, [#allocation9]  }
  0x15   : > { %1043 = dma.hbm_to_vmem [thread:$0]  (!%p1041_p11), %s150_s9, 1024, %s152_s11, [#allocation6], %s1313_s12, %s1313_s12, %s1314_s13  }
  0x16   : > { %s29_s15 = sadd.s32 1, %s1305_s21  ;;  %s181_s16 = sand.u32 1, %s1297_s19  }
  0x17   : > { %p30_p13 = scmp.ge.s32.totalorder %s29_s15, 2  ;;  %s828_s17 = sshll.u32 %s181_s16, 8 }
  0x18   : > { %s989_s24 = sshll.u32 %s1305_s21, 8  ;;  %s183_s7 = scalar_lea.vmem [#allocation8], %s828_s17 }
  0x19   : > { %s1528_s15 = smov (%p30_p13, %s29_s15), 0  ;;  %s189_s28 = scalar_lea.hbm %s1515_s2, %s989_s24 }
  0x1a   : > { %s57_s30 = ssub.s32 %s1305_s21, %s1528_s15  ;;  %s190_s5 = sshll.u32 %s189_s28, 4  ;;  %s191_s5 = int_to_ptr.hbm [resolvable:$true] %s190_s5 }
  0x1b   : > { %p60_p0 = scmp.eq.s32.totalorder %s57_s30, 0  ;;  %s192_s8 = sshll.u32 %s183_s7, 4  ;;  %s193_s8 = int_to_ptr.vmem [resolvable:$true] %s192_s8 }
  0x1c   : > { %s180_s10 = scalar_lea.sflag [#allocation9], %s179_s14  ;;  %s1315_s11 = smov 64  }
  0x1d   : > { %s1433_s9 = scalar_select %p60_p0, %s1297_s19, %s62_s23  }
  0x1e   : > { %s1316_s12 = smov 4   ;;  %204 = sbr.rel (%p1401_p8) target bundleno = 373 (0x175), region = 32 }
  0x1f   : > { %1050 = dma.hbm_to_vmem [thread:$0]  (!%p1412_p12), %s191_s5, 4096, %s193_s8, %s180_s10, %s1315_s11, %s1315_s11, %s1316_s12  }
  0x23   : > { %1272 = dma.done.wait (%p76_p3), [#allocation6], 1024  }
  0x24   : > { %1274 = vsyncadd (%p76_p3), [#allocation6], 4294966272  ;;  %s211_s23 = sand.u32 1, %s1378_s0   ;;  %s213_s13 = sand.u32 1, %s1293_s18  }
  0x25   : > { %s833_s16 = sshll.u32 %s213_s13, 8  ;;  %s212_s14 = scalar_lea.sflag [#allocation9], %s211_s23 }
  0x26   : > { %s1445_s17 = scalar_lea.vmem [#allocation8], %s833_s16 }
  0x27   : > { %1276 = dma.done.wait (%p1393_p6), %s212_s14, 4096  }
  0x28   : > { %1278 = vsyncadd (%p1393_p6), %s212_s14, 4294963200 }
  0x29   : > { %1280 = dma.done.wait (%p76_p3), [#allocation9], 128  }
  0x2a   : > { %1282 = vsyncadd (%p76_p3), [#allocation9], 4294967168  ;;  %v1001_v0 = vld [vmem:[%s1445_s17 + $0x38] sm:$0xff]  ;;  %v1000_v4 = vld [vmem:[%s1445_s17 + $0x30] sm:$0xff]  ;;  %s835_s25 = sshll.u32 %s1301_s20, 9  ;;  %p981_p1 = scmp.ne.s32.totalorder %s1301_s20, 0 }
  0x2b   : > { %v1009_v1 = vld [vmem:[%s1445_s17 + $0x78] sm:$0xff]  ;;  %525 = vmatpush.bf16.msra.mxu0 %v1001_v0  ;;  %v1008_v5 = vld [vmem:[%s1445_s17 + $0x70] sm:$0xff]  ;;  %v999_v8 = vld [vmem:[%s1445_s17 + $0x28] sm:$0xff]  ;;  %s241_s29 = sshra.s32 %s835_s25, 7 }
  0x2c   : > { %v1017_v2 = vld [vmem:[%s1445_s17 + $0xb8] sm:$0xff]  ;;  %539 = vmatpush.bf16.msra.mxu1 %v1009_v1  ;;  %v1016_v6 = vld [vmem:[%s1445_s17 + $0xb0] sm:$0xff]  ;;  %v1007_v9 = vld [vmem:[%s1445_s17 + $0x68] sm:$0xff]  ;;  %s836_s6 = sshll.u32 %s241_s29, 2 }
  0x2d   : > { %v1025_v3 = vld [vmem:[%s1445_s17 + $0xf8] sm:$0xff]  ;;  %553 = vmatpush.bf16.msra.mxu2 %v1017_v2  ;;  %v1024_v7 = vld [vmem:[%s1445_s17 + $0xf0] sm:$0xff]  ;;  %v1015_v10 = vld [vmem:[%s1445_s17 + $0xa8] sm:$0xff]  ;;  %s244_s24 = scalar_lea.vmem [#allocation5], %s836_s6 }
  0x2e   : > { %567 = vmatpush.bf16.msra.mxu3 %v1025_v3  ;;  %v1023_v11 = vld [vmem:[%s1445_s17 + $0xe8] sm:$0xff]  ;;  %v998_v12 = vld [vmem:[%s1445_s17 + $0x20] sm:$0xff]  ;;  %v997_v16 = vld [vmem:[%s1445_s17 + $0x18] sm:$0xff] }
  0x2f   : > { %526 = vmatpush.bf16.msra.mxu0 %v1000_v4  ;;  %v1006_v13 = vld [vmem:[%s1445_s17 + $0x60] sm:$0xff]  ;;  %v1005_v17 = vld [vmem:[%s1445_s17 + $0x58] sm:$0xff]  ;;  %v996_v20 = vld [vmem:[%s1445_s17 + $0x10] sm:$0xff] }
  0x30   : > { %540 = vmatpush.bf16.msra.mxu1 %v1008_v5  ;;  %v1014_v14 = vld [vmem:[%s1445_s17 + $0xa0] sm:$0xff]  ;;  %v1013_v18 = vld [vmem:[%s1445_s17 + $0x98] sm:$0xff]  ;;  %v1004_v21 = vld [vmem:[%s1445_s17 + $0x50] sm:$0xff] }
  0x31   : > { %554 = vmatpush.bf16.msra.mxu2 %v1016_v6  ;;  %v1022_v15 = vld [vmem:[%s1445_s17 + $0xe0] sm:$0xff]  ;;  %v1021_v19 = vld [vmem:[%s1445_s17 + $0xd8] sm:$0xff]  ;;  %v1012_v22 = vld [vmem:[%s1445_s17 + $0x90] sm:$0xff] }
  0x32   : > { %568 = vmatpush.bf16.msra.mxu3 %v1024_v7  ;;  %v1020_v23 = vld [vmem:[%s1445_s17 + $0xd0] sm:$0xff]  ;;  %v995_v24 = vld [vmem:[%s1445_s17 + $0x8] sm:$0xff]  ;;  %v994_v28 = vld [vmem:[%s1445_s17] sm:$0xff] }
  0x33   : > { %527 = vmatpush.bf16.msra.mxu0 %v999_v8  ;;  %v1003_v25 = vld [vmem:[%s1445_s17 + $0x48] sm:$0xff]  ;;  %v1002_v29 = vld [vmem:[%s1445_s17 + $0x40] sm:$0xff]  ;;  %v839_v32 = vld [vmem:[%s244_s24] sm:$0xf] }
  0x34   : > { %541 = vmatpush.bf16.msra.mxu1 %v1007_v9  ;;  %v1011_v26 = vld [vmem:[%s1445_s17 + $0x88] sm:$0xff]  ;;  %v1010_v30 = vld [vmem:[%s1445_s17 + $0x80] sm:$0xff]  ;;  %v992_v33 = vld [vmem:[%s244_s24 + $0x1c] sm:$0xf0] }
  0x35   : > { %555 = vmatpush.bf16.msra.mxu2 %v1015_v10  ;;  %v1019_v27 = vld [vmem:[%s1445_s17 + $0xc8] sm:$0xff]  ;;  %v1018_v31 = vld [vmem:[%s1445_s17 + $0xc0] sm:$0xff]  ;;  %v990_v34 = vld [vmem:[%s244_s24 + $0x4] sm:$0xf]  ;;  %v840_v40 = vor.u32 %v992_v33, %v839_v32 }
  0x36   : > { %569 = vmatpush.bf16.msra.mxu3 %v1023_v11  ;;  %v841_v35 = vld [vmem:[%s244_s24 + $0x20] sm:$0xf0]  ;;  %v847_v36 = vld [vmem:[%s244_s24 + $0x8] sm:$0xf]  ;;  %v991_v38 = vld [vmem:[%s244_s24 + $0xc] sm:$0xf] }
  0x37   : > { %528 = vmatpush.bf16.msra.mxu0 %v998_v12  ;;  %v993_v37 = vld [vmem:[%s244_s24 + $0x24] sm:$0xf0]  ;;  %v849_v39 = vld [vmem:[%s244_s24 + $0x28] sm:$0xf0]  ;;  %v844_v41 = vor.u32 %v990_v34, %v841_v35 }
  0x38   : > { %542 = vmatpush.bf16.msra.mxu1 %v1006_v13  ;;  %v848_v42 = vor.u32 %v993_v37, %v847_v36  ;;  %v852_v43 = vor.u32 %v991_v38, %v849_v39 }
  0x39   : > { %556 = vmatpush.bf16.msra.mxu2 %v1014_v14 }
  0x3a   : > { %570 = vmatpush.bf16.msra.mxu3 %v1022_v15 }
  0x3b   : > { %529 = vmatpush.bf16.msra.mxu0 %v997_v16 }
  0x3c   : > { %543 = vmatpush.bf16.msra.mxu1 %v1005_v17 }
  0x3d   : > { %557 = vmatpush.bf16.msra.mxu2 %v1013_v18 }
  0x3e   : > { %571 = vmatpush.bf16.msra.mxu3 %v1021_v19 }
  0x3f   : > { %530 = vmatpush.bf16.msra.mxu0 %v996_v20 }
  0x40   : > { %544 = vmatpush.bf16.msra.mxu1 %v1004_v21 }
  0x41   : > { %558 = vmatpush.bf16.msra.mxu2 %v1012_v22 }
  0x42   : > { %572 = vmatpush.bf16.msra.mxu3 %v1020_v23 }
  0x43   : > { %531 = vmatpush.bf16.msra.mxu0 %v995_v24 }
  0x44   : > { %545 = vmatpush.bf16.msra.mxu1 %v1003_v25 }
  0x45   : > { %559 = vmatpush.bf16.msra.mxu2 %v1011_v26 }
  0x46   : > { %573 = vmatpush.bf16.msra.mxu3 %v1019_v27 }
  0x47   : > { %532 = vmatpush.bf16.msra.mxu0 %v994_v28 }
  0x48   : > { %546 = vmatpush.bf16.msra.mxu1 %v1002_v29 }
  0x49   : > { %560 = vmatpush.bf16.msra.mxu2 %v1010_v30 }
  0x4a   : > { %574 = vmatpush.bf16.msra.mxu3 %v1018_v31  ;;  %533 = vmatmul.bf16.vlgmr.msra.gmra.mxu0 %v840_v40 }
  0x4b   : > { %547 = vmatmul.bf16.vlgmr.msra.gmra.mxu1 %v844_v41 }
  0x4c   : > { %561 = vmatmul.bf16.vlgmr.msra.gmra.mxu2 %v848_v42 }
  0x4d   : > { %575 = vmatmul.bf16.vlgmr.msra.gmra.mxu3 %v852_v43 }
  0xc7   : > { %v534_v44 = vpop.f32.mrf.mxu0 }
  0xc8   : > { %v548_v45 = vpop.f32.mrf.mxu1 }
  0xc9   : > { %v549_v46 = vadd.f32 %v548_v45, %v534_v44 }
  0xcf   : > { %v562_v47 = vpop.f32.mrf.mxu2  ;;  %v536_v51 = vpop.f32.mrf.mxu0 }
  0xd0   : > { %v576_v48 = vpop.f32.mrf.mxu3  ;;  %v563_v49 = vadd.f32 %v562_v47, %v549_v46  ;;  %v550_v52 = vpop.f32.mrf.mxu1 }
  0xd1   : > { %v551_v53 = vadd.f32 %v550_v52, %v536_v51 }
  0xd2   : > { %v577_v50 = vadd.f32 %v576_v48, %v563_v49 }
  0xd6   : > { %584 = sbr.rel (%p981_p1) target bundleno = 224 (0xe0), region = 48 }
  0xd7   : > { %v564_v54 = vpop.f32.mrf.mxu2 }
  0xd8   : > { %v565_v55 = vadd.f32 %v564_v54, %v551_v53  ;;  %v578_v56 = vpop.f32.mrf.mxu3 }
  0xda   : > { %v579_v57 = vadd.f32 %v578_v56, %v565_v55 }
  0xdb   : > { %v1116_v58 = vld [vmem:[#allocation10] ss:$0 sm:$0xff] }
  0xdc   : > { %v587_v59 = vadd.f32 %v1116_v58, %v577_v50  ;;  %v588_v60 = vadd.f32 %v1116_v58, %v579_v57 }
  0xde   : > { %589 = vst [vmem:[#allocation2] sm:$0xff] %v587_v59 }
  0xdf   : > { %590 = vst [vmem:[#allocation2 + $0x8] sm:$0xff] %v588_v60 }
  0xe0 PF: > { %p982_p2 = scmp.eq.s32.totalorder %s1301_s20, 0 }
  0xe2   : > { %594 = sbr.rel (%p982_p2) target bundleno = 236 (0xec), region = 52 }
  0xe7   : > { %v595_v61 = vld [vmem:[#allocation2] sm:$0xff]  ;;  %v596_v62 = vld [vmem:[#allocation2 + $0x8] sm:$0xff] }
  0xe8   : > { %v597_v63 = vadd.f32 %v595_v61, %v577_v50  ;;  %v598_v0 = vadd.f32 %v596_v62, %v579_v57 }
  0xea   : > { %599 = vst [vmem:[#allocation2] sm:$0xff] %v597_v63 }
  0xeb   : > { %600 = vst [vmem:[#allocation2 + $0x8] sm:$0xff] %v598_v0 }
  0xec PF: > { %p983_p3 = scmp.ne.s32.totalorder %s1301_s20, 1 }
  0xed   : > { %s664_s20 = sld [smem:[#allocation4]] (!%p983_p3) }
  0xee   : > { %604 = sbr.rel (%p983_p3) target bundleno = 367 (0x16f), region = 56 }
  0xf3   : > { %v606_v1 = vld [vmem:[#allocation2 + $0x8] sm:$0xff]  ;;  %v607_v2 = vlaneseq  ;;  %v605_v5 = vld [vmem:[#allocation2] sm:$0xff]  ;;  %v1317_v6 = vmov 0.0   ;;  %v1117_v39 = vld [vmem:[#allocation10 + $0x1] ss:$0 sm:$0xff]  ;;  %v665_v48 = vstv %s664_s20 }
  0xf4   : > { %v617_v4 = vmul.f32 0.0, %v606_v1  ;;  %v1118_v43 = vld [vmem:[#allocation10 + $0x2] ss:$0 sm:$0xff] }
  0xf5   : > { %v608_v3 = vshrl.u32 %v607_v2, 7 }
  0xf6   : > { %v627_v9 = vmul.f32 %v617_v4, %v606_v1 }
  0xf7   : > { %vm610_vm0 = vcmp.lt.s32.totalorder %v608_v3, 2 }
  0xf8   : > { %v984_v7 = vsel %vm610_vm0, 1.0, %v1317_v6 }
  0xf9   : > { %v616_v8 = vmul.f32 %v984_v7, %v605_v5 }
  0xfb   : > { %v618_v10 = vadd.f32 %v617_v4, %v616_v8  ;;  %v626_v11 = vmul.f32 %v616_v8, %v605_v5 }
  0xfd   : > { %v619_v12 = vrot.slane %v618_v10, 4  ;;  %v628_v13 = vadd.f32 %v627_v9, %v626_v11 }
  0xff   : > { %v620_v14 = vadd.f32 %v619_v12, %v618_v10  ;;  %v629_v15 = vrot.slane %v628_v13, 4 }
 0x101   : > { %v621_v16 = vrot.slane %v620_v14, 2  ;;  %v630_v17 = vadd.f32 %v629_v15, %v628_v13 }
 0x103   : > { %v622_v18 = vadd.f32 %v621_v16, %v620_v14  ;;  %v631_v19 = vrot.slane %v630_v17, 2 }
 0x105   : > { %v623_v20 = vrot.slane %v622_v18, 1  ;;  %v632_v21 = vadd.f32 %v631_v19, %v630_v17 }
 0x107   : > { %v624_v22 = vadd.f32 %v623_v20, %v622_v18  ;;  %v633_v23 = vrot.slane %v632_v21, 1 }
 0x109   : > { %v625_v24 = vmul.f32 0.5, %v624_v22  ;;  %v634_v25 = vadd.f32 %v633_v23, %v632_v21 }
 0x10b   : > { %v635_v26 = vmul.f32 0.5, %v634_v25  ;;  %v636_v27 = vmul.f32 %v625_v24, %v625_v24  ;;  %v639_v36 = vsub.f32 %v605_v5, %v625_v24  ;;  %v640_v37 = vsub.f32 %v606_v1, %v625_v24  ;;  %v1119_v25 = vld [vmem:[#allocation10 + $0x3] ss:$0 sm:$0xff] }
 0x10d   : > { %v637_v28 = vsub.f32 %v635_v26, %v636_v27 }
 0x10f   : > { %v638_v29 = vmax.f32 %v637_v28, 0.0  ;;  %v1120_v28 = vld [vmem:[#allocation10 + $0x4] ss:$0 sm:$0xff] }
 0x111   : > { %v641_v30 = vadd.f32 1e-05, %v638_v29 }
 0x113   : > { %1121 = vrsqrt.f32 %v641_v30  ;;  %vm648_vm1 = vweird.f32 %v641_v30 }
 0x119   : > { %v1122_v31 = vpop.eup %1121 }
 0x11a   : > { %v643_v32 = vmul.f32 %v1122_v31, %v641_v30  ;;  %vm649_vm2 = vweird.f32 %v1122_v31 }
 0x11b   : > { %vm650_vm3 = vmor %vm648_vm1, %vm649_vm2 }
 0x11c   : > { %v644_v33 = vmul.f32 %v1122_v31, %v643_v32 }
 0x11e   : > { %v645_v34 = vmul.f32 0.5, %v644_v33 }
 0x120   : > { %v646_v35 = vsub.f32 1.5, %v645_v34 }
 0x122   : > { %v647_v38 = vmul.f32 %v1122_v31, %v646_v35 }
 0x124   : > { %v651_v40 = vsel %vm650_vm3, %v1122_v31, %v647_v38 }
 0x125   : > { %v652_v41 = vmul.f32 %v651_v40, %v639_v36  ;;  %v653_v42 = vmul.f32 %v651_v40, %v640_v37 }
 0x127   : > { %v656_v44 = vmul.f32 %v1117_v39, %v652_v41  ;;  %v657_v45 = vmul.f32 %v1117_v39, %v653_v42 }
 0x129   : > { %v660_v46 = vadd.f32 %v1118_v43, %v656_v44  ;;  %v661_v47 = vadd.f32 %v1118_v43, %v657_v45 }
 0x12b   : > { %1123 = vtanh.f32 %v660_v46 }
 0x12c   : > { %1125 = vtanh.f32 %v661_v47 }
 0x131   : > { %v1124_v49 = vpop.eup %1123 }
 0x132   : > { %v1126_v50 = vpop.eup %1125  ;;  %v666_v51 = vmul.f32 %v1124_v49, %v665_v48 }
 0x133   : > { %v667_v52 = vmul.f32 %v1126_v50, %v665_v48 }
 0x134   : > { %v668_v53 = vmul.f32 %v666_v51, %v666_v51 }
 0x135   : > { %v669_v54 = vmul.f32 %v667_v52, %v667_v52 }
 0x136   : > { %v670_v55 = vmul.f32 0.25, %v668_v53 }
 0x137   : > { %v671_v56 = vmul.f32 0.25, %v669_v54 }
 0x138   : > { %v672_v57 = vmul.f32 %v984_v7, %v670_v55 }
 0x139   : > { %v673_v58 = vmul.f32 0.0, %v671_v56 }
 0x13a   : > { %v682_v59 = vmul.f32 %v672_v57, %v670_v55 }
 0x13b   : > { %v674_v60 = vadd.f32 %v673_v58, %v672_v57  ;;  %v683_v61 = vmul.f32 %v673_v58, %v671_v56 }
 0x13d   : > { %v675_v62 = vrot.slane %v674_v60, 4  ;;  %v684_v63 = vadd.f32 %v683_v61, %v682_v59 }
 0x13f   : > { %v676_v0 = vadd.f32 %v675_v62, %v674_v60  ;;  %v685_v1 = vrot.slane %v684_v63, 4 }
 0x141   : > { %v677_v2 = vrot.slane %v676_v0, 2  ;;  %v686_v3 = vadd.f32 %v685_v1, %v684_v63 }
 0x143   : > { %v678_v4 = vadd.f32 %v677_v2, %v676_v0  ;;  %v687_v5 = vrot.slane %v686_v3, 2 }
 0x145   : > { %v679_v6 = vrot.slane %v678_v4, 1  ;;  %v688_v8 = vadd.f32 %v687_v5, %v686_v3 }
 0x147   : > { %v680_v9 = vadd.f32 %v679_v6, %v678_v4  ;;  %v689_v10 = vrot.slane %v688_v8, 1 }
 0x149   : > { %v681_v11 = vmul.f32 0.5, %v680_v9  ;;  %v690_v12 = vadd.f32 %v689_v10, %v688_v8 }
 0x14b   : > { %v691_v13 = vmul.f32 0.5, %v690_v12  ;;  %v692_v7 = vmul.f32 %v681_v11, %v681_v11  ;;  %v695_v22 = vsub.f32 %v670_v55, %v681_v11  ;;  %v696_v23 = vsub.f32 %v671_v56, %v681_v11 }
 0x14d   : > { %v693_v14 = vsub.f32 %v691_v13, %v692_v7 }
 0x14f   : > { %v694_v15 = vmax.f32 %v693_v14, 0.0 }
 0x151   : > { %v697_v16 = vadd.f32 1e-05, %v694_v15 }
 0x153   : > { %1127 = vrsqrt.f32 %v697_v16  ;;  %vm704_vm4 = vweird.f32 %v697_v16 }
 0x159   : > { %v1128_v17 = vpop.eup %1127 }
 0x15a   : > { %v699_v18 = vmul.f32 %v1128_v17, %v697_v16  ;;  %vm705_vm5 = vweird.f32 %v1128_v17 }
 0x15b   : > { %vm706_vm6 = vmor %vm704_vm4, %vm705_vm5 }
 0x15c   : > { %v700_v19 = vmul.f32 %v1128_v17, %v699_v18 }
 0x15e   : > { %v701_v20 = vmul.f32 0.5, %v700_v19 }
 0x160   : > { %v702_v21 = vsub.f32 1.5, %v701_v20 }
 0x162   : > { %v703_v24 = vmul.f32 %v1128_v17, %v702_v21 }
 0x164   : > { %v707_v26 = vsel %vm706_vm6, %v1128_v17, %v703_v24 }
 0x165   : > { %v708_v27 = vmul.f32 %v707_v26, %v695_v22  ;;  %v709_v29 = vmul.f32 %v707_v26, %v696_v23 }
 0x167   : > { %v712_v30 = vmul.f32 %v1119_v25, %v708_v27  ;;  %v713_v31 = vmul.f32 %v1119_v25, %v709_v29 }
 0x169   : > { %v716_v32 = vadd.f32 %v1120_v28, %v712_v30  ;;  %v717_v33 = vadd.f32 %v1120_v28, %v713_v31 }
 0x16b   : > { %v718_v34 = vmax.f32 %v716_v32, 0.0  ;;  %v719_v35 = vmax.f32 %v717_v33, 0.0 }
 0x16d   : > { %720 = vst [vmem:[#allocation11] sm:$0xff] %v718_v34 }
 0x16e   : > { %721 = vst [vmem:[#allocation11 + $0x8] sm:$0xff] %v719_v35 }
 0x16f PF: > { %p1056_p4 = scmp.eq.s32.totalorder %s1378_s0, 1  ;;  %s731_s28 = sshll.u32 %s1517_s4, 4  ;;  %s732_s28 = int_to_ptr.hbm [resolvable:$true] %s731_s28 }
 0x170   : > { %s1318_s30 = smov [#allocation11]   ;;  %s1319_s7 = smov 128  }
 0x171   : > { %s729_s5 = sshll.u32 %s1318_s30, 4  ;;  %s1320_s8 = smov 8   ;;  %s730_s5 = int_to_ptr.vmem [resolvable:$true] %s729_s5 }
 0x172   : > { %1037 = dma.vmem_to_hbm [thread:$0]  (%p1056_p4), %s730_s5, 256, %s732_s28, [#allocation7], %s1319_s7, %s1319_s7, %s1320_s8  }
 0x173   : > { %1284 = dma.done.wait (%p1056_p4), [#allocation7], 256  }
 0x174   : > { %1286 = vsyncadd (%p1056_p4), [#allocation7], 4294967040 }
 0x175 PF: > { %s20_s22 = sadd.s32 1, %s1309_s22   ;;  %s1522_s17 = smov %s1293_s18 }
 0x176   : > { %p17_p5 = scmp.ge.s32.totalorder %s20_s22, 4   ;;  %s1523_s18 = smov %s1297_s19 }
 0x177   : > { %s1524_s19 = smov %s1433_s9  ;;  %s1525_s20 = smov %s1305_s21 }
 0x178   : > { %s1526_s21 = smov %s1528_s15  ;;  %19 = sbr.rel (!%p17_p5) target bundleno = 8 (0x8), region = 93 }
 0x17d   :  { %748 = vsyncpa [#allocation6], 1 }
 0x17e   :  { %750 = vsyncpa [#allocation6 + $0x1], 1 }
 0x17f   :  { %751 = vsyncpa [#allocation9], 1 }
 0x180   :  { %753 = vsyncpa [#allocation9 + $0x1], 1 }
 0x181   :  { %754 = vsyncpa [#allocation7], 1 }
 0x182   :  { %756 = vsyncpa [#allocation7 + $0x1], 1 }

</bundles_post_ra>
